<compile_context>
chip_gen: v7x
topology: tpu7x:2x2x1
jax: 0.10.0
libtpu: 0.0.40
codegen_flags: <defaults>
</compile_context>

<pallas_src>
import functools

import jax
import jax.numpy as jnp
from jax.experimental import pallas as pl
from jax.experimental.pallas import tpu as pltpu


def _round_up(x, m):
    return ((x + m - 1) // m) * m


def _bn1d_stats_kernel(x_ref, gamma_ref, beta_ref, rm_ref, rv_ref,
                       scale_ref, shift_ref, nrm_ref, nrv_ref,
                       sum_acc, sumsq_acc, *, n_valid, eps, momentum):
    """Phase 1: streaming per-channel reduction + finalize (scale/shift, EMA)."""
    j = pl.program_id(1)  # reduction (rows) axis — last grid axis

    @pl.when(j == 0)
    def _():
        sum_acc[...] = jnp.zeros_like(sum_acc)
        sumsq_acc[...] = jnp.zeros_like(sumsq_acc)

    x = x_ref[...].astype(jnp.float32)
    sum_acc[...] += jnp.sum(x, axis=0, keepdims=True)
    sumsq_acc[...] += jnp.sum(x * x, axis=0, keepdims=True)

    @pl.when(j == pl.num_programs(1) - 1)
    def _():
        n = jnp.float32(n_valid)
        mean = sum_acc[...] / n
        # Unbiased variance (torch.var default / this module).  Clamp at 0 to
        # guard against tiny negative values from the sumsq formulation.
        # NOTE: n_valid == 1 gives inf/nan, same as torch.var(unbiased=True).
        var = (sumsq_acc[...] - n * mean * mean) / jnp.float32(n_valid - 1)
        var = jnp.maximum(var, 0.0)

        inv_std = jax.lax.rsqrt(var + jnp.float32(eps))
        gamma = gamma_ref[...].astype(jnp.float32)
        beta = beta_ref[...].astype(jnp.float32)
        scale = gamma * inv_std
        shift = beta - mean * scale
        scale_ref[...] = scale
        shift_ref[...] = shift

        # Fused running-stat EMA (the torch.no_grad() block of the module).
        m = jnp.float32(momentum)
        nrm_ref[...] = (1.0 - m) * rm_ref[...].astype(jnp.float32) + m * mean
        nrv_ref[...] = (1.0 - m) * rv_ref[...].astype(jnp.float32) + m * var


def _bn1d_norm_kernel(x_ref, scale_ref, shift_ref, out_ref):
    """Phase 2: single FMA per element with precomputed scale/shift."""
    x = x_ref[...].astype(jnp.float32)
    out_ref[...] = (x * scale_ref[...] + shift_ref[...]).astype(out_ref.dtype)


def batchnorm1d_forward(x, gamma, beta, running_mean, running_var,
                        eps=1e-5, momentum=0.1):
    """Training-mode BatchNorm1d forward.

    x: (N, C) or (B, T, C), channels last.
    Returns (out, new_running_mean, new_running_var).
    """
    orig_shape = x.shape
    if x.ndim == 3:
        x2d = x.reshape(-1, x.shape[-1])      # reduce over (0, 1) == rows
    elif x.ndim == 2:
        x2d = x
    else:
        raise ValueError("BatchNorm1d expects 2-D or 3-D input")

    n, c = x2d.shape

    # Lane-dense channel tiling: pad C up to a multiple of 128, tile at <=512.
    cp = _round_up(c, 128)
    tc = min(cp, 512)
    cp = _round_up(cp, tc)

    # Row tiling: multiple of 8 (f32 sublane), <=1024 rows -> tile <= 2 MiB
    # f32, so 2x(in)+2x(out) double buffers fit even v5e's 16 MiB scoped VMEM.
    tn = min(_round_up(n, 8), 1024)
    np_ = _round_up(n, tn)

    # Zero-pad rows / channels.  Zero rows contribute nothing to sum / sumsq
    # (we divide by the true n), and padded channels are sliced off below.
    x_p = x2d
    if (np_, cp) != (n, c):
        x_p = jnp.pad(x2d, ((0, np_ - n), (0, cp - c)))

    def _pad_param(v):
        v = v.reshape(1, c).astype(jnp.float32)
        if cp != c:
            v = jnp.pad(v, ((0, 0), (0, cp - c)))
        return v

    gamma_p = _pad_param(gamma)
    beta_p = _pad_param(beta)
    rm_p = _pad_param(running_mean)
    rv_p = _pad_param(running_var)

    grid = (cp // tc, np_ // tn)
    row_spec = pl.BlockSpec((tn, tc), lambda i, j: (j, i))
    ch_spec = pl.BlockSpec((1, tc), lambda i, j: (0, i))

    # ---- Phase 1: per-channel statistics -> scale/shift + running stats ----
    scale_p, shift_p, nrm_p, nrv_p = pl.pallas_call(
        functools.partial(_bn1d_stats_kernel, n_valid=n, eps=eps,
                          momentum=momentum),
        out_shape=(
            jax.ShapeDtypeStruct((1, cp), jnp.float32),   # scale
            jax.ShapeDtypeStruct((1, cp), jnp.float32),   # shift
            jax.ShapeDtypeStruct((1, cp), jnp.float32),   # new running mean
            jax.ShapeDtypeStruct((1, cp), jnp.float32),   # new running var
        ),
        grid_spec=pltpu.PrefetchScalarGridSpec(
            num_scalar_prefetch=0,
            grid=grid,
            in_specs=[row_spec, ch_spec, ch_spec, ch_spec, ch_spec],
            out_specs=[ch_spec, ch_spec, ch_spec, ch_spec],
            scratch_shapes=[
                pltpu.VMEM((1, tc), jnp.float32),   # sum accumulator
                pltpu.VMEM((1, tc), jnp.float32),   # sum-of-squares accumulator
            ],
        ),
        compiler_params=pltpu.CompilerParams(
            dimension_semantics=("parallel", "arbitrary")),
    )(x_p, gamma_p, beta_p, rm_p, rv_p)

    # ---- Phase 2: normalize (out = x * scale + shift) ----
    out_p = pl.pallas_call(
        _bn1d_norm_kernel,
        out_shape=jax.ShapeDtypeStruct((np_, cp), x2d.dtype),
        grid_spec=pltpu.PrefetchScalarGridSpec(
            num_scalar_prefetch=0,
            grid=grid,
            in_specs=[row_spec, ch_spec, ch_spec],
            out_specs=row_spec,
        ),
        compiler_params=pltpu.CompilerParams(
            dimension_semantics=("parallel", "parallel")),
    )(x_p, scale_p, shift_p)

    out = out_p[:n, :c].reshape(orig_shape)
    new_running_mean = nrm_p[0, :c].astype(running_mean.dtype)
    new_running_var = nrv_p[0, :c].astype(running_var.dtype)
    return out, new_running_mean, new_running_var


if __name__ == "__main__":
    key = jax.random.PRNGKey(0)
    B, T, C = 2, 8, 32   # 3-D channels-last input (reduce over axes (0, 1))

    # Parameter init matching the module's __init__.
    gamma = jnp.ones((C,), jnp.float32)
    beta = jnp.zeros((C,), jnp.float32)
    running_mean = jnp.zeros((C,), jnp.float32)
    running_var = jnp.ones((C,), jnp.float32)

    x3 = jax.random.normal(key, (B, T, C), jnp.float32)

    out, rm, rv = batchnorm1d_forward(x3, gamma, beta, running_mean, running_var)
    jax.block_until_ready((out, rm, rv))

    # Reference (plain JAX, unbiased variance, same axes as the module).
    xmean = x3.mean(axis=(0, 1), keepdims=True)
    xvar = x3.var(axis=(0, 1), ddof=1, keepdims=True)
    ref = gamma * ((x3 - xmean) / jnp.sqrt(xvar + 1e-5)) + beta
    ref_rm = 0.9 * running_mean + 0.1 * xmean.reshape(-1)
    ref_rv = 0.9 * running_var + 0.1 * xvar.reshape(-1)
    assert jnp.allclose(out, ref, atol=2e-5, rtol=1e-5)
    assert jnp.allclose(rm, ref_rm, atol=2e-5, rtol=1e-5)
    assert jnp.allclose(rv, ref_rv, atol=2e-5, rtol=1e-5)

    # Also exercise the 2-D path (N, C).
    x2 = jax.random.normal(jax.random.PRNGKey(1), (8, C), jnp.float32)
    out2, rm2, rv2 = batchnorm1d_forward(x2, gamma, beta, running_mean, running_var)
    jax.block_until_ready((out2, rm2, rv2))
    m2 = x2.mean(axis=0, keepdims=True)
    v2 = x2.var(axis=0, ddof=1, keepdims=True)
    ref2 = gamma * ((x2 - m2) / jnp.sqrt(v2 + 1e-5)) + beta
    assert jnp.allclose(out2, ref2, atol=2e-5, rtol=1e-5)

    print("KERNEL_OK")
</pallas_src>

<mosaic_0001>
module attributes {stable_mosaic.version = 11 : i64} {
  func.func @_bn1d_stats_kernel(%arg0: i32, %arg1: i32, %arg2: memref<16x128xf32, #tpu.memory_space<vmem>>, %arg3: memref<1x128xf32, #tpu.memory_space<vmem>>, %arg4: memref<1x128xf32, #tpu.memory_space<vmem>>, %arg5: memref<1x128xf32, #tpu.memory_space<vmem>>, %arg6: memref<1x128xf32, #tpu.memory_space<vmem>>, %arg7: memref<1x128xf32, #tpu.memory_space<vmem>>, %arg8: memref<1x128xf32, #tpu.memory_space<vmem>>, %arg9: memref<1x128xf32, #tpu.memory_space<vmem>>, %arg10: memref<1x128xf32, #tpu.memory_space<vmem>>, %arg11: memref<1x128xf32, #tpu.memory_space<vmem>>, %arg12: memref<1x128xf32, #tpu.memory_space<vmem>>) attributes {dimension_semantics = [#tpu.dimension_semantics<parallel>, #tpu.dimension_semantics<arbitrary>], iteration_bounds = array<i64: 1, 1>, scalar_prefetch = 0 : i64, scratch_operands = 2 : i64, tpu.core_type = #tpu.core_type<tc>, window_params = [{transform_indices = @transform_0, window_bounds = array<i64: 16, 128>}, {transform_indices = @transform_1, window_bounds = array<i64: 1, 128>}, {transform_indices = @transform_2, window_bounds = array<i64: 1, 128>}, {transform_indices = @transform_3, window_bounds = array<i64: 1, 128>}, {transform_indices = @transform_4, window_bounds = array<i64: 1, 128>}, {transform_indices = @transform_5, window_bounds = array<i64: 1, 128>}, {transform_indices = @transform_6, window_bounds = array<i64: 1, 128>}, {transform_indices = @transform_7, window_bounds = array<i64: 1, 128>}, {transform_indices = @transform_8, window_bounds = array<i64: 1, 128>}]} {
    %c0_i32 = arith.constant 0 : i32
    %0 = arith.cmpi eq, %arg1, %c0_i32 : i32
    %1 = arith.extui %0 : i1 to i32
    %c0_i32_0 = arith.constant 0 : i32
    %2 = arith.cmpi ne, %1, %c0_i32_0 : i32
    scf.if %2 {
      %cst_13 = arith.constant 0.000000e+00 : f32
      %18 = vector.broadcast %cst_13 : f32 to vector<1x128xf32>
      %c0_14 = arith.constant 0 : index
      %c0_15 = arith.constant 0 : index
      %19 = vector.load %arg11[%c0_14, %c0_15] : memref<1x128xf32, #tpu.memory_space<vmem>>, vector<1x128xf32>
      tpu.vector_store %arg11[%c0_14, %c0_15], %18 {strides = array<i32>} : memref<1x128xf32, #tpu.memory_space<vmem>>, vector<1x128xf32>,
      %cst_16 = arith.constant 0.000000e+00 : f32
      %20 = vector.broadcast %cst_16 : f32 to vector<1x128xf32>
      %c0_17 = arith.constant 0 : index
      %c0_18 = arith.constant 0 : index
      %21 = vector.load %arg12[%c0_17, %c0_18] : memref<1x128xf32, #tpu.memory_space<vmem>>, vector<1x128xf32>
      tpu.vector_store %arg12[%c0_17, %c0_18], %20 {strides = array<i32>} : memref<1x128xf32, #tpu.memory_space<vmem>>, vector<1x128xf32>,
    } else {
    }
    %c0 = arith.constant 0 : index
    %c0_1 = arith.constant 0 : index
    %3 = vector.load %arg2[%c0, %c0_1] : memref<16x128xf32, #tpu.memory_space<vmem>>, vector<16x128xf32>
    %c0_2 = arith.constant 0 : index
    %c0_3 = arith.constant 0 : index
    %4 = vector.load %arg11[%c0_2, %c0_3] : memref<1x128xf32, #tpu.memory_space<vmem>>, vector<1x128xf32>
    %cst = arith.constant dense<0.000000e+00> : vector<128xf32>
    %5 = vector.multi_reduction <add>, %3, %cst [0] : vector<16x128xf32> to vector<128xf32>
    %6 = vector.shape_cast %5 : vector<128xf32> to vector<1x128xf32>
    %7 = arith.addf %4, %6 : vector<1x128xf32>
    %c0_4 = arith.constant 0 : index
    %c0_5 = arith.constant 0 : index
    %8 = vector.load %arg11[%c0_4, %c0_5] : memref<1x128xf32, #tpu.memory_space<vmem>>, vector<1x128xf32>
    tpu.vector_store %arg11[%c0_4, %c0_5], %7 {strides = array<i32>} : memref<1x128xf32, #tpu.memory_space<vmem>>, vector<1x128xf32>,
    %c0_6 = arith.constant 0 : index
    %c0_7 = arith.constant 0 : index
    %9 = vector.load %arg12[%c0_6, %c0_7] : memref<1x128xf32, #tpu.memory_space<vmem>>, vector<1x128xf32>
    %10 = arith.mulf %3, %3 : vector<16x128xf32>
    %cst_8 = arith.constant dense<0.000000e+00> : vector<128xf32>
    %11 = vector.multi_reduction <add>, %10, %cst_8 [0] : vector<16x128xf32> to vector<128xf32>
    %12 = vector.shape_cast %11 : vector<128xf32> to vector<1x128xf32>
    %13 = arith.addf %9, %12 : vector<1x128xf32>
    %c0_9 = arith.constant 0 : index
    %c0_10 = arith.constant 0 : index
    %14 = vector.load %arg12[%c0_9, %c0_10] : memref<1x128xf32, #tpu.memory_space<vmem>>, vector<1x128xf32>
    tpu.vector_store %arg12[%c0_9, %c0_10], %13 {strides = array<i32>} : memref<1x128xf32, #tpu.memory_space<vmem>>, vector<1x128xf32>,
    %c0_i32_11 = arith.constant 0 : i32
    %15 = arith.cmpi eq, %arg1, %c0_i32_11 : i32
    %16 = arith.extui %15 : i1 to i32
    %c0_i32_12 = arith.constant 0 : i32
    %17 = arith.cmpi ne, %16, %c0_i32_12 : i32
    scf.if %17 {
      %c0_13 = arith.constant 0 : index
      %c0_14 = arith.constant 0 : index
      %18 = vector.load %arg11[%c0_13, %c0_14] : memref<1x128xf32, #tpu.memory_space<vmem>>, vector<1x128xf32>
      %cst_15 = arith.constant 1.600000e+01 : f32
      %19 = vector.broadcast %cst_15 : f32 to vector<1x128xf32>
      %20 = arith.divf %18, %19 : vector<1x128xf32>
      %c0_16 = arith.constant 0 : index
      %c0_17 = arith.constant 0 : index
      %21 = vector.load %arg12[%c0_16, %c0_17] : memref<1x128xf32, #tpu.memory_space<vmem>>, vector<1x128xf32>
      %cst_18 = arith.constant 1.600000e+01 : f32
      %22 = vector.broadcast %cst_18 : f32 to vector<1x128xf32>
      %23 = arith.mulf %22, %20 : vector<1x128xf32>
      %24 = arith.mulf %23, %20 : vector<1x128xf32>
      %25 = arith.subf %21, %24 : vector<1x128xf32>
      %cst_19 = arith.constant 1.500000e+01 : f32
      %26 = vector.broadcast %cst_19 : f32 to vector<1x128xf32>
      %27 = arith.divf %25, %26 : vector<1x128xf32>
      %cst_20 = arith.constant 0.000000e+00 : f32
      %28 = vector.broadcast %cst_20 : f32 to vector<1x128xf32>
      %29 = arith.maximumf %27, %28 : vector<1x128xf32>
      %cst_21 = arith.constant 9.99999974E-6 : f32
      %30 = vector.broadcast %cst_21 : f32 to vector<1x128xf32>
      %31 = arith.addf %29, %30 : vector<1x128xf32>
      %32 = math.rsqrt %31 : vector<1x128xf32>
      %c0_22 = arith.constant 0 : index
      %c0_23 = arith.constant 0 : index
      %33 = vector.load %arg3[%c0_22, %c0_23] : memref<1x128xf32, #tpu.memory_space<vmem>>, vector<1x128xf32>
      %c0_24 = arith.constant 0 : index
      %c0_25 = arith.constant 0 : index
      %34 = vector.load %arg4[%c0_24, %c0_25] : memref<1x128xf32, #tpu.memory_space<vmem>>, vector<1x128xf32>
      %35 = arith.mulf %33, %32 : vector<1x128xf32>
      %36 = arith.mulf %20, %35 : vector<1x128xf32>
      %37 = arith.subf %34, %36 : vector<1x128xf32>
      %c0_26 = arith.constant 0 : index
      %c0_27 = arith.constant 0 : index
      %38 = vector.load %arg7[%c0_26, %c0_27] : memref<1x128xf32, #tpu.memory_space<vmem>>, vector<1x128xf32>
      tpu.vector_store %arg7[%c0_26, %c0_27], %35 {strides = array<i32>} : memref<1x128xf32, #tpu.memory_space<vmem>>, vector<1x128xf32>,
      %c0_28 = arith.constant 0 : index
      %c0_29 = arith.constant 0 : index
      %39 = vector.load %arg8[%c0_28, %c0_29] : memref<1x128xf32, #tpu.memory_space<vmem>>, vector<1x128xf32>
      tpu.vector_store %arg8[%c0_28, %c0_29], %37 {strides = array<i32>} : memref<1x128xf32, #tpu.memory_space<vmem>>, vector<1x128xf32>,
      %cst_30 = arith.constant 1.000000e+00 : f32
      %cst_31 = arith.constant 1.000000e-01 : f32
      %40 = arith.subf %cst_30, %cst_31 : f32
      %c0_32 = arith.constant 0 : index
      %c0_33 = arith.constant 0 : index
      %41 = vector.load %arg5[%c0_32, %c0_33] : memref<1x128xf32, #tpu.memory_space<vmem>>, vector<1x128xf32>
      %42 = vector.broadcast %40 : f32 to vector<1x128xf32>
      %43 = arith.mulf %42, %41 : vector<1x128xf32>
      %cst_34 = arith.constant 1.000000e-01 : f32
      %44 = vector.broadcast %cst_34 : f32 to vector<1x128xf32>
      %45 = arith.mulf %44, %20 : vector<1x128xf32>
      %46 = arith.addf %43, %45 : vector<1x128xf32>
      %c0_35 = arith.constant 0 : index
      %c0_36 = arith.constant 0 : index
      %47 = vector.load %arg9[%c0_35, %c0_36] : memref<1x128xf32, #tpu.memory_space<vmem>>, vector<1x128xf32>
      tpu.vector_store %arg9[%c0_35, %c0_36], %46 {strides = array<i32>} : memref<1x128xf32, #tpu.memory_space<vmem>>, vector<1x128xf32>,
      %cst_37 = arith.constant 1.000000e+00 : f32
      %cst_38 = arith.constant 1.000000e-01 : f32
      %48 = arith.subf %cst_37, %cst_38 : f32
      %c0_39 = arith.constant 0 : index
      %c0_40 = arith.constant 0 : index
      %49 = vector.load %arg6[%c0_39, %c0_40] : memref<1x128xf32, #tpu.memory_space<vmem>>, vector<1x128xf32>
      %50 = vector.broadcast %48 : f32 to vector<1x128xf32>
      %51 = arith.mulf %50, %49 : vector<1x128xf32>
      %cst_41 = arith.constant 1.000000e-01 : f32
      %52 = vector.broadcast %cst_41 : f32 to vector<1x128xf32>
      %53 = arith.mulf %52, %29 : vector<1x128xf32>
      %54 = arith.addf %51, %53 : vector<1x128xf32>
      %c0_42 = arith.constant 0 : index
      %c0_43 = arith.constant 0 : index
      %55 = vector.load %arg10[%c0_42, %c0_43] : memref<1x128xf32, #tpu.memory_space<vmem>>, vector<1x128xf32>
      tpu.vector_store %arg10[%c0_42, %c0_43], %54 {strides = array<i32>} : memref<1x128xf32, #tpu.memory_space<vmem>>, vector<1x128xf32>,
    } else {
    }
    return
  }
  func.func @transform_0(%arg0: i32, %arg1: i32) -> (i32, i32) {
    %c0_i32 = arith.constant 0 : i32
    return %arg1, %arg0 : i32, i32
  }
  func.func @transform_1(%arg0: i32, %arg1: i32) -> (i32, i32) {
    %c0_i32 = arith.constant 0 : i32
    %c0_i32_0 = arith.constant 0 : i32
    return %c0_i32, %arg0 : i32, i32
  }
  func.func @transform_2(%arg0: i32, %arg1: i32) -> (i32, i32) {
    %c0_i32 = arith.constant 0 : i32
    %c0_i32_0 = arith.constant 0 : i32
    return %c0_i32, %arg0 : i32, i32
  }
  func.func @transform_3(%arg0: i32, %arg1: i32) -> (i32, i32) {
    %c0_i32 = arith.constant 0 : i32
    %c0_i32_0 = arith.constant 0 : i32
    return %c0_i32, %arg0 : i32, i32
  }
  func.func @transform_4(%arg0: i32, %arg1: i32) -> (i32, i32) {
    %c0_i32 = arith.constant 0 : i32
    %c0_i32_0 = arith.constant 0 : i32
    return %c0_i32, %arg0 : i32, i32
  }
  func.func @transform_5(%arg0: i32, %arg1: i32) -> (i32, i32) {
    %c0_i32 = arith.constant 0 : i32
    %c0_i32_0 = arith.constant 0 : i32
    return %c0_i32, %arg0 : i32, i32
  }
  func.func @transform_6(%arg0: i32, %arg1: i32) -> (i32, i32) {
    %c0_i32 = arith.constant 0 : i32
    %c0_i32_0 = arith.constant 0 : i32
    return %c0_i32, %arg0 : i32, i32
  }
  func.func @transform_7(%arg0: i32, %arg1: i32) -> (i32, i32) {
    %c0_i32 = arith.constant 0 : i32
    %c0_i32_0 = arith.constant 0 : i32
    return %c0_i32, %arg0 : i32, i32
  }
  func.func @transform_8(%arg0: i32, %arg1: i32) -> (i32, i32) {
    %c0_i32 = arith.constant 0 : i32
    %c0_i32_0 = arith.constant 0 : i32
    return %c0_i32, %arg0 : i32, i32
  }
}

</mosaic_0001>

<bundles_post_ra>
// kernel: tpu_custom_call.1
= control target key start
LH: loop header
LB: loop body
LE: loop exit
PB: predicated region body
PF: predicated region fallthrough
CT: control target
= control target key end

     0   :  { %14 = vsyncpa [#allocation5], 0  ;;  %s420_s0 = inlined_call_operand.hbm [shape: f32[16,128], index: 0, kind: input, shape index: {}]   ;;  %s421_s1 = inlined_call_operand.vmem [shape: f32[1,128], index: 1, kind: input, shape index: {}]   ;;  %s422_s2 = inlined_call_operand.vmem [shape: f32[1,128], index: 2, kind: input, shape index: {}]   ;;  %s423_s3 = inlined_call_operand.vmem [shape: f32[1,128], index: 3, kind: input, shape index: {}]   ;;  %s424_s4 = inlined_call_operand.vmem [shape: f32[1,128], index: 4, kind: input, shape index: {}]   ;;  %s425_s5 = inlined_call_operand.hbm [shape: f32[1,128], index: 5, kind: output, shape index: {0}]   ;;  %s426_s6 = inlined_call_operand.hbm [shape: f32[1,128], index: 6, kind: output, shape index: {1}]   ;;  %s427_s7 = inlined_call_operand.hbm [shape: f32[1,128], index: 7, kind: output, shape index: {2}]   ;;  %s428_s8 = inlined_call_operand.hbm [shape: f32[1,128], index: 8, kind: output, shape index: {3}]  }
   0x1   :  { %15 = vsyncpa [#allocation6], 0 }
   0x2   :  { %16 = vsyncpa [#allocation9], 0 }
   0x3   :  { %17 = vsyncpa [#allocation12], 0  ;;  %s287_s27 = smov [#allocation4]   ;;  %s169_s9 = scalar_lea.hbm %s420_s0, 256 }
   0x4   :  { %s23_s28 = sshll.u32 %s287_s27, 4  ;;  %p170_p0 = scmp.ne.s32.totalorder %s420_s0, %s169_s9  ;;  %s24_s28 = int_to_ptr.vmem [resolvable:$true] %s23_s28 }
   0x5   :  { %p173_p1 = scmp.lt.u32.totalorder %s169_s9, %s420_s0 }
   0x7   :  { %p175_p2 = pnand %p173_p1, %p170_p0 }
   0x9   :  { %178 = shalt.err (!%p175_p2)
}
   0xa   :  { %s179_s14 = scalar_lea.vmem %s24_s28, 256  ;;  %p184_p4 = scmp.lt.s32.totalorder %s24_s28, %s24_s28 }
   0xb   :  { %p180_p3 = scmp.ne.s32.totalorder %s24_s28, %s179_s14  ;;  %p185_p5 = scmp.lt.s32.totalorder %s179_s14, %s179_s14 }
   0xd   :  { %p186_p6 = por %p185_p5, %p184_p4 }
   0xf   :  { %p187_p7 = pnand %p186_p6, %p180_p3 }
  0x11   :  { %190 = shalt.err (!%p187_p7)
}
  0x12   :  { %s288_s15 = smov 128   ;;  %s289_s16 = smov 8  }
  0x13   :  { %29 = dma.hbm_to_vmem [thread:$0]  %s420_s0, 256, %s24_s28, [#allocation5], %s288_s15, %s288_s15, %s289_s16  }
  0x14   :  { %279 = dma.done.wait [#allocation5], 256  }
  0x15   :  { %280 = vsyncadd [#allocation5], 4294967040  ;;  %v290_v0 = vmov 0.0   ;;  %v47_v1 = vld [vmem:[#allocation4] sm:$0xff]  ;;  %v48_v2 = vld [vmem:[#allocation4 + $0x8] sm:$0xff]  ;;  %s291_s22 = smov [#allocation11]  }
  0x16   :  { %45 = vst [vmem:[#allocation2] sm:$0x1] %v290_v0  ;;  %46 = vst [vmem:[#allocation3] sm:$0x1] %v290_v0  ;;  %v50_v3 = vadd.f32 %v48_v2, %v47_v1  ;;  %v60_v4 = vmul.f32 %v47_v1, %v47_v1  ;;  %v61_v5 = vmul.f32 %v48_v2, %v48_v2  ;;  %v93_v23 = vld [vmem:[%s423_s3] sm:$0x1] }
  0x17   :  { %v94_v26 = vmul.f32 0.9, %v93_v23  ;;  %v98_v33 = vld [vmem:[%s424_s4] sm:$0x1]  ;;  %s139_s23 = sshll.u32 %s291_s22, 4  ;;  %s140_s23 = int_to_ptr.vmem [resolvable:$true] %s139_s23 }
  0x18   :  { %v51_v6 = vrot.slane %v50_v3, 4  ;;  %v62_v7 = vadd.f32 %v61_v5, %v60_v4  ;;  %v99_v36 = vmul.f32 0.9, %v98_v33  ;;  %s191_s3 = scalar_lea.vmem %s140_s23, 16  ;;  %s195_s24 = scalar_lea.vmem %s140_s23, 32 }
  0x19   :  { %p192_p8 = scmp.ne.s32.totalorder %s140_s23, %s191_s3  ;;  %p196_p9 = scmp.lt.s32.totalorder %s140_s23, %s140_s23 }
  0x1a   :  { %v52_v8 = vadd.f32 %v51_v6, %v50_v3  ;;  %v63_v9 = vrot.slane %v62_v7, 4  ;;  %p197_p10 = scmp.lt.s32.totalorder %s195_s24, %s191_s3 }
  0x1c   :  { %v53_v10 = vrot.slane %v52_v8, 2  ;;  %v64_v11 = vadd.f32 %v63_v9, %v62_v7  ;;  %p198_p11 = por %p197_p10, %p196_p9 }
  0x1d   :  { %v49_v16 = vld [vmem:[#allocation2] sm:$0x1]  ;;  %v59_v19 = vld [vmem:[#allocation3] sm:$0x1] }
  0x1e   :  { %v54_v12 = vadd.f32 %v53_v10, %v52_v8  ;;  %v65_v13 = vrot.slane %v64_v11, 2  ;;  %p199_p12 = pnand %p198_p11, %p192_p8 }
  0x20   :  { %v55_v14 = vrot.slane %v54_v12, 1  ;;  %v66_v15 = vadd.f32 %v65_v13, %v64_v11 }
  0x22   :  { %v56_v17 = vadd.f32 %v55_v14, %v54_v12  ;;  %v67_v18 = vrot.slane %v66_v15, 1 }
  0x24   :  { %v57_v20 = vadd.f32 %v56_v17, %v49_v16  ;;  %v68_v21 = vadd.f32 %v67_v18, %v66_v15 }
  0x26   :  { %58 = vst [vmem:[#allocation2] sm:$0x1] %v57_v20  ;;  %v69_v22 = vadd.f32 %v68_v21, %v59_v19 }
  0x28   :  { %70 = vst [vmem:[#allocation3] sm:$0x1] %v69_v22 }
  0x2d   :  { %v74_v24 = vld [vmem:[#allocation2] sm:$0x1] }
  0x2e   :  { %v76_v25 = vmul.f32 0.0625, %v74_v24 }
  0x2f   :  { %v77_v29 = vld [vmem:[#allocation3] sm:$0x1] }
  0x30   :  { %v95_v27 = vmul.f32 0.1, %v76_v25  ;;  %v78_v28 = vmul.f32 16.0, %v76_v25 }
  0x32   :  { %v96_v30 = vadd.f32 %v95_v27, %v94_v26  ;;  %v79_v31 = vmul.f32 %v78_v28, %v76_v25 }
  0x34   :  { %97 = vst [vmem:[#allocation10] sm:$0x1] %v96_v30  ;;  %v80_v32 = vsub.f32 %v77_v29, %v79_v31 }
  0x36   :  { %v82_v34 = vmul.f32 0.06666667, %v80_v32 }
  0x38   :  { %v83_v35 = vmax.f32 %v82_v34, 0.0 }
  0x3a   :  { %v84_v37 = vadd.f32 1e-05, %v83_v35  ;;  %v100_v38 = vmul.f32 0.1, %v83_v35 }
  0x3c   :  { %167 = vrsqrt.f32 %v84_v37  ;;  %v101_v39 = vadd.f32 %v100_v38, %v99_v36 }
  0x3e   :  { %102 = vst [vmem:[#allocation11] sm:$0x1] %v101_v39 }
  0x3f   :  { %202 = shalt.err (!%p199_p12)
}
  0x40   :  { %s203_s26 = scalar_lea.hbm %s428_s8, 16 }
  0x41   :  { %p204_p13 = scmp.ne.s32.totalorder %s428_s8, %s203_s26  ;;  %p207_p0 = scmp.lt.u32.totalorder %s203_s26, %s428_s8 }
  0x43   :  { %p209_p1 = pnand %p207_p0, %p204_p13 }
  0x45   :  { %212 = shalt.err (!%p209_p1)
}
  0x46   :  { %142 = dma.vmem_to_hbm [thread:$0]  %s140_s23, 16, %s428_s8, [#allocation12]   ;;  %v86_v40 = vld [vmem:[%s421_s1] sm:$0x1]  ;;  %v168_v41 = vpop.eup %167 }
  0x47   :  { %s292_s13 = smov [#allocation7]   ;;  %v88_v42 = vmul.f32 %v168_v41, %v86_v40  ;;  %v87_v43 = vld [vmem:[%s422_s2] sm:$0x1]  ;;  %s293_s17 = smov [#allocation8]  }
  0x48   :  { %s109_s14 = sshll.u32 %s292_s13, 4  ;;  %s119_s18 = sshll.u32 %s293_s17, 4  ;;  %s110_s14 = int_to_ptr.vmem [resolvable:$true] %s109_s14  ;;  %s120_s18 = int_to_ptr.vmem [resolvable:$true] %s119_s18 }
  0x49   :  { %91 = vst [vmem:[#allocation7] sm:$0x1] %v88_v42  ;;  %v89_v44 = vmul.f32 %v88_v42, %v76_v25  ;;  %s294_s0 = smov [#allocation10]   ;;  %s213_s8 = scalar_lea.vmem %s110_s14, 16 }
  0x4a   :  { %s129_s19 = sshll.u32 %s294_s0, 4  ;;  %p214_p2 = scmp.ne.s32.totalorder %s110_s14, %s213_s8  ;;  %s388_s19 = int_to_ptr.vmem [resolvable:$true] %s129_s19 }
  0x4b   :  { %s217_s20 = scalar_lea.vmem %s110_s14, 32  ;;  %p218_p3 = scmp.lt.s32.totalorder %s110_s14, %s110_s14 }
  0x4c   :  { %p219_p4 = scmp.lt.s32.totalorder %s217_s20, %s213_s8 }
  0x4e   :  { %p220_p5 = por %p219_p4, %p218_p3 }
  0x50   :  { %p221_p6 = pnand %p220_p5, %p214_p2 }
  0x52   :  { %224 = shalt.err (!%p221_p6)
}
  0x53   :  { %s225_s22 = scalar_lea.hbm %s425_s5, 16 }
  0x54   :  { %p226_p7 = scmp.ne.s32.totalorder %s425_s5, %s225_s22  ;;  %p229_p8 = scmp.lt.u32.totalorder %s225_s22, %s425_s5 }
  0x56   :  { %p231_p9 = pnand %p229_p8, %p226_p7 }
  0x58   :  { %234 = shalt.err (!%p231_p9)
}
  0x59   :  { %112 = dma.vmem_to_hbm [thread:$0]  %s110_s14, 16, %s425_s5, [#allocation6]   ;;  %v90_v45 = vsub.f32 %v87_v43, %v89_v44 }
  0x5a   :  { %s235_s26 = scalar_lea.vmem %s120_s18, 16  ;;  %s239_s27 = scalar_lea.vmem %s120_s18, 32 }
  0x5b   :  { %92 = vst [vmem:[#allocation8] sm:$0x1] %v90_v45  ;;  %p236_p10 = scmp.ne.s32.totalorder %s120_s18, %s235_s26  ;;  %p240_p11 = scmp.lt.s32.totalorder %s120_s18, %s120_s18 }
  0x5c   :  { %p241_p12 = scmp.lt.s32.totalorder %s239_s27, %s235_s26 }
  0x5e   :  { %p242_p13 = por %p241_p12, %p240_p11 }
  0x60   :  { %p243_p0 = pnand %p242_p13, %p236_p10 }
  0x62   :  { %246 = shalt.err (!%p243_p0)
}
  0x63   :  { %s247_s30 = scalar_lea.hbm %s426_s6, 16 }
  0x64   :  { %p248_p1 = scmp.ne.s32.totalorder %s426_s6, %s247_s30  ;;  %p251_p2 = scmp.lt.u32.totalorder %s247_s30, %s426_s6 }
  0x66   :  { %p253_p3 = pnand %p251_p2, %p248_p1 }
  0x68   :  { %256 = shalt.err (!%p253_p3)
}
  0x69   :  { %122 = dma.vmem_to_hbm [thread:$0]  %s120_s18, 16, %s426_s6, [#allocation9]  }
  0x6a   :  { %s257_s14 = scalar_lea.vmem %s388_s19, 16  ;;  %s261_s15 = scalar_lea.vmem %s388_s19, 32 }
  0x6b   :  { %p258_p4 = scmp.ne.s32.totalorder %s388_s19, %s257_s14  ;;  %p262_p5 = scmp.lt.s32.totalorder %s388_s19, %s388_s19 }
  0x6c   :  { %p263_p6 = scmp.lt.s32.totalorder %s261_s15, %s257_s14 }
  0x6e   :  { %p264_p7 = por %p263_p6, %p262_p5 }
  0x70   :  { %p265_p8 = pnand %p264_p7, %p258_p4 }
  0x72   :  { %268 = shalt.err (!%p265_p8)
}
  0x73   :  { %s269_s0 = scalar_lea.hbm %s427_s7, 16 }
  0x74   :  { %p270_p9 = scmp.ne.s32.totalorder %s427_s7, %s269_s0  ;;  %p273_p10 = scmp.lt.u32.totalorder %s269_s0, %s427_s7 }
  0x76   :  { %p275_p11 = pnand %p273_p10, %p270_p9 }
  0x78   :  { %278 = shalt.err (!%p275_p11)
}
  0x79   :  { %132 = dma.vmem_to_hbm [thread:$0]  %s388_s19, 16, %s427_s7, [#allocation9]  }
  0x7a   :  { %281 = dma.done.wait [#allocation6], 16  }
  0x7b   :  { %282 = vsyncadd [#allocation6], 4294967280 }
  0x7c   :  { %283 = dma.done.wait [#allocation9], 32  }
  0x7d   :  { %284 = vsyncadd [#allocation9], 4294967264 }
  0x7e   :  { %285 = dma.done.wait [#allocation12], 16  }
  0x7f   :  { %286 = vsyncadd [#allocation12], 4294967280 }
  0x80   :  { %155 = vsyncpa [#allocation5], 1 }
  0x81   :  { %156 = vsyncpa [#allocation6], 1 }
  0x82   :  { %157 = vsyncpa [#allocation9], 1 }
  0x83   :  { %158 = vsyncpa [#allocation12], 1 }

</bundles_post_ra>
